<compile_context>
chip_gen: v5e
topology: v5e:2x2
jax: 0.10.0
libtpu: 0.0.40
codegen_flags: <defaults>
</compile_context>

<pallas_src>
import jax
import jax.numpy as jnp
from jax.experimental import pallas as pl
from jax.experimental.pallas import tpu as pltpu

EPS = 1e-10
_LANE = 128
# Budget for one (input block + output block) pair, single-buffered (f32 bytes).
# Pallas double-buffers each, so the real footprint is ~2x this -> 8 MiB,
# comfortably under the 16 MiB v5e default scoped-VMEM limit and far under
# v6e (32/128 MiB) and v7x (32/64 MiB).
_BLOCK_PAIR_BUDGET_BYTES = 4 * 1024 * 1024


def _round_up(a, b):
    return (a + b - 1) // b * b


def _l2norm_kernel(x_ref, w_ref, o_ref):
    # x_ref: (BN, C, T) block in VMEM;  w_ref: (1, C, 1);  o_ref: (BN, C, T)
    x = x_ref[...].astype(jnp.float32)
    # sum of squares over channels (sublane/XLU reduce), keepdim
    sq_sum = jnp.sum(x * x, axis=1, keepdims=True)            # (BN, 1, T)
    # hoisted reciprocal: one EUP op per (n, hw) row, not per element
    inv = pl.reciprocal(jnp.sqrt(sq_sum) + EPS)                # (BN, 1, T)
    w = w_ref[...].astype(jnp.float32)                         # (1, C, 1)
    o_ref[...] = (x * inv * w).astype(o_ref.dtype)             # 2 VPU muls/elem


def _choose_tiles(N, C, HW):
    """Pick (BN, TILE_HW): lane tile multiple of 128, block pair within budget."""
    max_block_elems = _BLOCK_PAIR_BUDGET_BYTES // (2 * 4)      # in + out, f32
    tile_hw = (max_block_elems // max(C, 1)) // _LANE * _LANE
    tile_hw = max(_LANE, min(tile_hw, 2048, _round_up(HW, _LANE)))
    bn = 1
    for cand in range(min(N, 8), 0, -1):                       # fold batch rows
        if N % cand == 0 and cand * C * tile_hw <= max_block_elems:
            bn = cand
            break
    return bn, tile_hw


def l2norm(x, weight):
    """S3FD L2Norm forward. x: (N, C, H, W) float array; weight: (C,) scale."""
    N, C, H, W = x.shape
    HW = H * W
    bn, tile_hw = _choose_tiles(N, C, HW)

    HW_pad = _round_up(HW, tile_hw)
    x2 = x.reshape(N, C, HW)
    if HW_pad != HW:
        # Zero padding is safe: padded lanes produce norm = eps -> 0 * (1/eps) = 0,
        # and they are sliced off below. Keeps the output block lane-dense
        # (unmasked full-lane vst) instead of ragged masked stores.
        x2 = jnp.pad(x2, ((0, 0), (0, 0), (0, HW_pad - HW)))
    w2 = weight.reshape(1, C, 1).astype(jnp.float32)

    grid = (N // bn, HW_pad // tile_hw)

    out = pl.pallas_call(
        _l2norm_kernel,
        out_shape=jax.ShapeDtypeStruct((N, C, HW_pad), x.dtype),
        grid_spec=pltpu.PrefetchScalarGridSpec(
            num_scalar_prefetch=0,
            grid=grid,
            in_specs=[
                pl.BlockSpec((bn, C, tile_hw), lambda n, t: (n, 0, t)),
                pl.BlockSpec((1, C, 1), lambda n, t: (0, 0, 0)),
            ],
            out_specs=pl.BlockSpec((bn, C, tile_hw), lambda n, t: (n, 0, t)),
        ),
        compiler_params=pltpu.CompilerParams(
            # both axes independent -> megacore sharding on v7x's 2 TCs
            dimension_semantics=("parallel", "parallel"),
        ),
    )(x2, w2)

    if HW_pad != HW:
        out = out[:, :, :HW]
    return out.reshape(N, C, H, W)


def l2norm_reference(x, weight):
    norm = jnp.sqrt(jnp.sum(x * x, axis=1, keepdims=True)) + EPS
    return weight.reshape(1, -1, 1, 1) * (x / norm)


if __name__ == "__main__":
    key = jax.random.PRNGKey(0)
    gamma = 10.0  # as in S3FD L2Norm(n_channels, scale): init.constant_(weight, gamma)

    # Main small test (matches the module's expected NCHW usage).
    N, C, H, W = 2, 4, 16, 16
    x = jax.random.normal(key, (N, C, H, W), dtype=jnp.float32)
    weight = jnp.full((C,), gamma, dtype=jnp.float32)

    out = jax.block_until_ready(l2norm(x, weight))
    ref = l2norm_reference(x, weight)
    assert out.shape == (N, C, H, W)
    assert jnp.allclose(out, ref, atol=1e-5, rtol=1e-5), "mismatch vs reference"

    # Extra check: non-128-aligned spatial size exercises the lane-padding path.
    key2 = jax.random.fold_in(key, 1)
    x2 = jax.random.normal(key2, (1, 4, 13, 13), dtype=jnp.float32)
    out2 = jax.block_until_ready(l2norm(x2, weight))
    ref2 = l2norm_reference(x2, weight)
    assert jnp.allclose(out2, ref2, atol=1e-5, rtol=1e-5), "mismatch (padded path)"

    print("KERNEL_OK")
</pallas_src>

<mosaic_0001>
module attributes {stable_mosaic.version = 11 : i64} {
  func.func @_l2norm_kernel(%arg0: i32, %arg1: i32, %arg2: memref<2x4x256xf32, #tpu.memory_space<vmem>>, %arg3: memref<1x4x1xf32, #tpu.memory_space<vmem>>, %arg4: memref<2x4x256xf32, #tpu.memory_space<vmem>>) attributes {dimension_semantics = [#tpu.dimension_semantics<parallel>, #tpu.dimension_semantics<parallel>], iteration_bounds = array<i64: 1, 1>, scalar_prefetch = 0 : i64, scratch_operands = 0 : i64, tpu.core_type = #tpu.core_type<tc>, window_params = [{transform_indices = @transform_0, window_bounds = array<i64: 2, 4, 256>}, {pipeline_mode = #tpu.pipeline_mode<synchronous>, transform_indices = @transform_1, window_bounds = array<i64: 1, 4, 1>}, {transform_indices = @transform_2, window_bounds = array<i64: 2, 4, 256>}]} {
    %c0 = arith.constant 0 : index
    %c0_0 = arith.constant 0 : index
    %c0_1 = arith.constant 0 : index
    %0 = vector.load %arg2[%c0, %c0_0, %c0_1] : memref<2x4x256xf32, #tpu.memory_space<vmem>>, vector<2x4x256xf32>
    %1 = arith.mulf %0, %0 : vector<2x4x256xf32>
    %cst = arith.constant dense<0.000000e+00> : vector<2x256xf32>
    %2 = vector.multi_reduction <add>, %1, %cst [1] : vector<2x4x256xf32> to vector<2x256xf32>
    %3 = vector.shape_cast %2 : vector<2x256xf32> to vector<2x1x256xf32>
    %4 = math.sqrt %3 : vector<2x1x256xf32>
    %cst_2 = arith.constant 1.000000e-10 : f32
    %5 = vector.broadcast %cst_2 : f32 to vector<2x1x256xf32>
    %6 = arith.addf %4, %5 : vector<2x1x256xf32>
    %7 = tpu.reciprocal %6 : vector<2x1x256xf32> -> vector<2x1x256xf32>
    %c0_3 = arith.constant 0 : index
    %c0_4 = arith.constant 0 : index
    %c0_5 = arith.constant 0 : index
    %8 = vector.load %arg3[%c0_3, %c0_4, %c0_5] : memref<1x4x1xf32, #tpu.memory_space<vmem>>, vector<1x4x1xf32>
    %9 = vector.broadcast %7 : vector<2x1x256xf32> to vector<2x4x256xf32>
    %10 = arith.mulf %0, %9 : vector<2x4x256xf32>
    %11 = vector.broadcast %8 : vector<1x4x1xf32> to vector<2x4x256xf32>
    %12 = arith.mulf %10, %11 : vector<2x4x256xf32>
    %c0_6 = arith.constant 0 : index
    %c0_7 = arith.constant 0 : index
    %c0_8 = arith.constant 0 : index
    %13 = vector.load %arg4[%c0_6, %c0_7, %c0_8] : memref<2x4x256xf32, #tpu.memory_space<vmem>>, vector<2x4x256xf32>
    tpu.vector_store %arg4[%c0_6, %c0_7, %c0_8], %12 {strides = array<i32>} : memref<2x4x256xf32, #tpu.memory_space<vmem>>, vector<2x4x256xf32>,
    return
  }
  func.func @transform_0(%arg0: i32, %arg1: i32) -> (i32, i32, i32) {
    %c0_i32 = arith.constant 0 : i32
    %c0_i32_0 = arith.constant 0 : i32
    return %arg0, %c0_i32, %arg1 : i32, i32, i32
  }
  func.func @transform_1(%arg0: i32, %arg1: i32) -> (i32, i32, i32) {
    %c0_i32 = arith.constant 0 : i32
    %c0_i32_0 = arith.constant 0 : i32
    %c0_i32_1 = arith.constant 0 : i32
    %c0_i32_2 = arith.constant 0 : i32
    return %c0_i32, %c0_i32_0, %c0_i32_1 : i32, i32, i32
  }
  func.func @transform_2(%arg0: i32, %arg1: i32) -> (i32, i32, i32) {
    %c0_i32 = arith.constant 0 : i32
    %c0_i32_0 = arith.constant 0 : i32
    return %arg0, %c0_i32, %arg1 : i32, i32, i32
  }
}

</mosaic_0001>

<bundles_post_ra>
// kernel: tpu_custom_call.1
= control target key start
LH: loop header
LB: loop body
LE: loop exit
PB: predicated region body
PF: predicated region fallthrough
CT: control target
= control target key end

     0   :  { %7 = vsyncpa [#allocation3], 0  ;;  %s372_s0 = inlined_call_operand.hbm [shape: f32[2,4,256], index: 0, kind: input, shape index: {}]   ;;  %s373_s1 = inlined_call_operand.vmem [shape: f32[1,4,1], index: 1, kind: input, shape index: {}]   ;;  %s374_s2 = inlined_call_operand.hbm [shape: f32[2,4,256], index: 2, kind: output, shape index: {}]  }
   0x1   :  { %8 = vsyncpa [#allocation4], 0  ;;  %s13_s11 = sshll.u32 %s372_s0, 4  ;;  %s302_s12 = smov [#allocation2]   ;;  %s14_s11 = int_to_ptr.hbm [resolvable:$true] %s13_s11 }
   0x2   :  { %s15_s13 = sshll.u32 %s302_s12, 4  ;;  %s303_s14 = smov 128   ;;  %s16_s13 = int_to_ptr.vmem [resolvable:$true] %s15_s13 }
   0x3   :  { %s304_s15 = smov 8  }
   0x4   :  { %21 = dma.hbm_to_vmem [thread:$0]  %s14_s11, 256, %s16_s13, [#allocation3], %s303_s14, %s303_s14, %s304_s15  }
   0x5   :  { %298 = dma.done.wait [#allocation3], 256  }
   0x6   :  { %299 = vsyncadd [#allocation3], 4294967040  ;;  %v305_v0 = vmov 0   ;;  %v182_v1 = vld [vmem:[%s373_s1] sm:$0xf]  ;;  %v332_v2 = vld [vmem:[#allocation2] sm:$0xff] }
   0x7   :  { %233 = vset.pattern.permute.xlu0 %v305_v0  ;;  %v334_v3 = vld [vmem:[#allocation2 + $0x8] sm:$0xff]  ;;  %v30_v4 = vmul.f32 %v332_v2, %v332_v2  ;;  %vm45_vm0 = vcmask 1043456   ;;  %s307_s0 = smov [#allocation5]   ;;  %s214_s20 = sshll.u32 %s374_s2, 4  ;;  %s215_s20 = int_to_ptr.hbm [resolvable:$true] %s214_s20 }
   0x8   :  { %197 = vperm.xlu0 %233, %v182_v1   ;;  %v31_v5 = vmul.f32 %v334_v3, %v334_v3  ;;  %s212_s1 = sshll.u32 %s307_s0, 4  ;;  %s213_s1 = int_to_ptr.vmem [resolvable:$true] %s212_s1 }
   0x9   :  { %34 = vst [vmem:[#allocation1] ss:$2 sm:$0xff] %v30_v4 }
   0xa   :  { %38 = vst [vmem:[#allocation1 + $0x10] ss:$2 sm:$0xff] %v31_v5 }
  0x10   :  { %v36_v6 = vld.sshfl [vmem:[#allocation1 + $0x8] sm:$0xff pattern:$0x75316420]  ;;  %v35_v9 = vld.sshfl [vmem:[#allocation1] sm:$0xff pattern:$0x75316420] }
  0x11   :  { %v40_v7 = vld.sshfl [vmem:[#allocation1 + $0x18] sm:$0xff pattern:$0x75316420]  ;;  %v53_v8 = vsel %vm45_vm0, %v36_v6, 0.0  ;;  %v46_v11 = vsel %vm45_vm0, %v35_v9, 0.0 }
  0x12   :  { %v39_v10 = vld.sshfl [vmem:[#allocation1 + $0x10] sm:$0xff pattern:$0x75316420]  ;;  %v54_v12 = vrot.slane %v53_v8, 4  ;;  %v67_v14 = vsel %vm45_vm0, %v40_v7, 0.0  ;;  %v47_v15 = vrot.slane %v46_v11, 4 }
  0x13   :  { %v60_v13 = vsel %vm45_vm0, %v39_v10, 0.0  ;;  %v68_v17 = vrot.slane %v67_v14, 4 }
  0x14   :  { %v61_v16 = vrot.slane %v60_v13, 4  ;;  %v55_v18 = vadd.f32 %v54_v12, %v53_v8  ;;  %v48_v19 = vadd.f32 %v47_v15, %v46_v11 }
  0x15   :  { %v69_v21 = vadd.f32 %v68_v17, %v67_v14 }
  0x16   :  { %v62_v20 = vadd.f32 %v61_v16, %v60_v13  ;;  %v56_v22 = vrot.slane %v55_v18, 2  ;;  %v49_v23 = vrot.slane %v48_v19, 2 }
  0x17   :  { %v70_v25 = vrot.slane %v69_v21, 2 }
  0x18   :  { %v63_v24 = vrot.slane %v62_v20, 2  ;;  %v57_v26 = vadd.f32 %v56_v22, %v55_v18  ;;  %v50_v27 = vadd.f32 %v49_v23, %v48_v19 }
  0x19   :  { %v71_v29 = vadd.f32 %v70_v25, %v69_v21 }
  0x1a   :  { %v64_v28 = vadd.f32 %v63_v24, %v62_v20  ;;  %v58_v30 = vrot.slane %v57_v26, 1  ;;  %v51_v31 = vrot.slane %v50_v27, 1 }
  0x1b   :  { %v72_v33 = vrot.slane %v71_v29, 1 }
  0x1c   :  { %v65_v32 = vrot.slane %v64_v28, 1  ;;  %v59_v34 = vadd.f32 %v58_v30, %v57_v26  ;;  %v52_v35 = vadd.f32 %v51_v31, %v50_v27 }
  0x1d   :  { %v73_v37 = vadd.f32 %v72_v33, %v71_v29 }
  0x1e   :  { %v66_v36 = vadd.f32 %v65_v32, %v64_v28  ;;  %234 = vrsqrt.f32 %v59_v34  ;;  %vm93_vm1 = vcmp.eq.f32.partialorder %v59_v34, inf  ;;  %v96_v0 = vand.u32 2147483648, %v59_v34 }
  0x1f   :  { %236 = vrsqrt.f32 %v52_v35  ;;  %vm117_vm2 = vcmp.eq.f32.partialorder %v73_v37, inf  ;;  %vm81_vm3 = vcmp.eq.f32.partialorder %v52_v35, inf  ;;  %vm95_vm4 = vcmp.eq.f32.partialorder %v59_v34, 0.0 }
  0x20   :  { %238 = vrsqrt.f32 %v66_v36  ;;  %v120_v5 = vand.u32 2147483648, %v73_v37  ;;  %vm119_vm5 = vcmp.eq.f32.partialorder %v73_v37, 0.0  ;;  %v84_v8 = vand.u32 2147483648, %v52_v35 }
  0x21   :  { %240 = vrsqrt.f32 %v73_v37  ;;  %vm105_vm6 = vcmp.eq.f32.partialorder %v66_v36, inf  ;;  %vm83_vm7 = vcmp.eq.f32.partialorder %v52_v35, 0.0  ;;  %v108_v11 = vand.u32 2147483648, %v66_v36 }
  0x22   :  { %vm107_vm8 = vcmp.eq.f32.partialorder %v66_v36, 0.0 }
  0x24   :  { %v235_v38 = vpop.eup %234 }
  0x25   :  { %v237_v39 = vpop.eup %236  ;;  %v87_v40 = vmul.f32 %v235_v38, %v59_v34 }
  0x26   :  { %v239_v41 = vpop.eup %238  ;;  %v75_v42 = vmul.f32 %v237_v39, %v52_v35 }
  0x27   :  { %v241_v43 = vpop.eup %240  ;;  %v88_v44 = vmul.f32 %v235_v38, %v87_v40  ;;  %v99_v45 = vmul.f32 %v239_v41, %v66_v36 }
  0x28   :  { %v76_v46 = vmul.f32 %v237_v39, %v75_v42  ;;  %v111_v47 = vmul.f32 %v241_v43, %v73_v37 }
  0x29   :  { %v89_v48 = vmul.f32 0.5, %v88_v44  ;;  %v100_v49 = vmul.f32 %v239_v41, %v99_v45 }
  0x2a   :  { %v77_v50 = vmul.f32 0.5, %v76_v46  ;;  %v112_v51 = vmul.f32 %v241_v43, %v111_v47 }
  0x2b   :  { %v90_v52 = vsub.f32 1.5, %v89_v48  ;;  %v101_v53 = vmul.f32 0.5, %v100_v49 }
  0x2c   :  { %v78_v54 = vsub.f32 1.5, %v77_v50  ;;  %v113_v55 = vmul.f32 0.5, %v112_v51 }
  0x2d   :  { %v91_v56 = vmul.f32 %v235_v38, %v90_v52  ;;  %v102_v57 = vsub.f32 1.5, %v101_v53 }
  0x2e   :  { %v114_v58 = vsub.f32 1.5, %v113_v55  ;;  %v79_v59 = vmul.f32 %v237_v39, %v78_v54 }
  0x2f   :  { %v92_v61 = vmul.f32 %v91_v56, %v59_v34  ;;  %v103_v62 = vmul.f32 %v239_v41, %v102_v57 }
  0x30   :  { %v115_v60 = vmul.f32 %v241_v43, %v114_v58  ;;  %v80_v63 = vmul.f32 %v79_v59, %v52_v35 }
  0x31   :  { %v94_v4 = vsel %vm93_vm1, %v59_v34, %v92_v61  ;;  %v104_v6 = vmul.f32 %v103_v62, %v66_v36 }
  0x32   :  { %v116_v1 = vmul.f32 %v115_v60, %v73_v37  ;;  %v82_v9 = vsel %vm81_vm3, %v52_v35, %v80_v63  ;;  %v97_v10 = vsel %vm95_vm4, %v96_v0, %v94_v4  ;;  %v306_v63 = vmov 839922192  }
  0x33   :  { %v106_v13 = vsel %vm105_vm6, %v66_v36, %v104_v6  ;;  %v85_v14 = vsel %vm83_vm7, %v84_v8, %v82_v9  ;;  %v123_v15 = vadd.f32 1e-10, %v97_v10  ;;  %v200_v0 = vunpack.c.l.s4 %v306_v63 }
  0x34   :  { %v118_v7 = vsel %vm117_vm2, %v73_v37, %v116_v1  ;;  %v109_v17 = vsel %vm107_vm8, %v108_v11, %v106_v13  ;;  %v122_v18 = vadd.f32 1e-10, %v85_v14 }
  0x35   :  { %v121_v12 = vsel %vm119_vm5, %v120_v5, %v118_v7  ;;  %242 = vrcp.f32 %v123_v15  ;;  %v124_v19 = vadd.f32 1e-10, %v109_v17  ;;  %vm145_vm9 = vweird.f32 %v123_v15 }
  0x36   :  { %v125_v16 = vadd.f32 1e-10, %v121_v12  ;;  %v151_v34 = vand.u32 2147483648, %v123_v15  ;;  %v149_v37 = vand.u32 2147483647, %v123_v15  ;;  %vm131_vm14 = vweird.f32 %v122_v18 }
  0x37   :  { %v137_v43 = vand.u32 2147483648, %v122_v18  ;;  %v135_v47 = vand.u32 2147483647, %v122_v18  ;;  %vm159_vm2 = vweird.f32 %v124_v19  ;;  %v165_v49 = vand.u32 2147483648, %v124_v19 }
  0x38   :  { %244 = vrcp.f32 %v125_v16  ;;  %vm173_vm11 = vweird.f32 %v125_v16  ;;  %v179_v38 = vand.u32 2147483648, %v125_v16  ;;  %v177_v42 = vand.u32 2147483647, %v125_v16 }
  0x39   :  { %246 = vrcp.f32 %v122_v18  ;;  %v152_v44 = vor.u32 1.1754944e-38, %v151_v34  ;;  %vm150_vm4 = vcmp.eq.f32.partialorder %v149_v37, 8.507059e+37  ;;  %v163_v53 = vand.u32 2147483647, %v124_v19 }
  0x3a   :  { %248 = vrcp.f32 %v124_v19  ;;  %v180_v50 = vor.u32 1.1754944e-38, %v179_v38  ;;  %vm178_vm6 = vcmp.eq.f32.partialorder %v177_v42, 8.507059e+37  ;;  %v138_v55 = vor.u32 1.1754944e-38, %v137_v43 }
  0x3b   :  { %v243_v20 = vpop.eup %242  ;;  %v166_v57 = vor.u32 1.1754944e-38, %v165_v49  ;;  %vm136_vm8 = vcmp.eq.f32.partialorder %v135_v47, 8.507059e+37  ;;  %v201_v7 = vunpack.c.0.s8 %v200_v0 }
  0x3c   :  { %v141_v23 = vmul.f32 %v243_v20, %v123_v15  ;;  %vm146_vm10 = vweird.f32 %v243_v20 }
  0x3d   :  { %vm344_vm13 = vmor %vm145_vm9, %vm146_vm10  ;;  %vm164_vm9 = vcmp.eq.f32.partialorder %v163_v53, 8.507059e+37 }
  0x3e   :  { %v245_v21 = vpop.eup %244  ;;  %v142_v27 = vsub.f32 1.0, %v141_v23 }
  0x3f   :  { %v247_v22 = vpop.eup %246  ;;  %v169_v24 = vmul.f32 %v245_v21, %v125_v16  ;;  %vm174_vm12 = vweird.f32 %v245_v21 }
  0x40   :  { %v249_v25 = vpop.eup %248  ;;  %v127_v26 = vmul.f32 %v247_v22, %v122_v18  ;;  %v143_v31 = vmul.f32 %v243_v20, %v142_v27  ;;  %vm132_vm15 = vweird.f32 %v247_v22  ;;  %vm348_vm1 = vmor %vm173_vm11, %vm174_vm12 }
  0x41   :  { %v155_v28 = vmul.f32 %v249_v25, %v124_v19  ;;  %v170_v29 = vsub.f32 1.0, %v169_v24  ;;  %vm160_vm3 = vweird.f32 %v249_v25  ;;  %vm354_vm5 = vmor %vm131_vm14, %vm132_vm15 }
  0x42   :  { %v128_v30 = vsub.f32 1.0, %v127_v26  ;;  %v144_v36 = vadd.f32 %v243_v20, %v143_v31  ;;  %vm161_vm7 = vmor %vm159_vm2, %vm160_vm3 }
  0x43   :  { %v156_v32 = vsub.f32 1.0, %v155_v28  ;;  %v171_v33 = vmul.f32 %v245_v21, %v170_v29 }
  0x44   :  { %v129_v35 = vmul.f32 %v247_v22, %v128_v30  ;;  %v148_v48 = vsel %vm344_vm13, %v243_v20, %v144_v36 }
  0x45   :  { %v157_v40 = vmul.f32 %v249_v25, %v156_v32  ;;  %v172_v41 = vadd.f32 %v245_v21, %v171_v33  ;;  %v153_v56 = vsel %vm150_vm4, %v152_v44, %v148_v48 }
  0x46   :  { %v130_v46 = vadd.f32 %v247_v22, %v129_v35  ;;  %v187_v61 = vrot.slane %v153_v56, 4 }
  0x47   :  { %v158_v52 = vadd.f32 %v249_v25, %v157_v40  ;;  %v176_v54 = vsel %vm348_vm1, %v245_v21, %v172_v41 }
  0x48   :  { %v181_v58 = vsel %vm178_vm6, %v180_v50, %v176_v54  ;;  %v134_v59 = vsel %vm354_vm5, %v247_v22, %v130_v46 }
  0x49   :  { %v162_v60 = vsel %vm161_vm7, %v249_v25, %v158_v52  ;;  %v188_v62 = vrot.slane %v181_v58, 4  ;;  %v139_v1 = vsel %vm136_vm8, %v138_v55, %v134_v59 }
  0x4a   :  { %v167_v4 = vsel %vm164_vm9, %v166_v57, %v162_v60  ;;  %v189_v5 = vsel %vm45_vm0, %v139_v1, %v187_v61 }
  0x4b   :  { %v190_v6 = vsel %vm45_vm0, %v167_v4, %v188_v62  ;;  %v193_v8 = vmul.f32 %v189_v5, %v332_v2 }
  0x4c   :  { %v194_v9 = vmul.f32 %v190_v6, %v334_v3 }
  0x7a   :  { %v198_v10 = vpop.permute.xlu0 %197 }
  0x7b   :  { %v202_v11 = vperm.slane %v198_v10, %v201_v7 }
  0x7d   :  { %v204_v12 = vmul.f32 %v202_v11, %v193_v8  ;;  %v205_v13 = vmul.f32 %v202_v11, %v194_v9 }
  0x7f   :  { %206 = vst [vmem:[#allocation5] sm:$0xff] %v204_v12 }
  0x80   :  { %207 = vst [vmem:[#allocation5 + $0x8] sm:$0xff] %v205_v13 }
  0x81   :  { %220 = dma.vmem_to_hbm [thread:$0]  %s213_s1, 256, %s215_s20, [#allocation4], %s303_s14, %s303_s14, %s304_s15  }
  0x82   :  { %300 = dma.done.wait [#allocation4], 256  }
  0x83   :  { %301 = vsyncadd [#allocation4], 4294967040 }
  0x84   :  { %225 = vsyncpa [#allocation3], 1 }
  0x85   :  { %226 = vsyncpa [#allocation4], 1 }

</bundles_post_ra>
